<compile_context>
chip_gen: v5e
topology: v5e:2x2
jax: 0.10.0
libtpu: 0.0.40
codegen_flags: <defaults>
</compile_context>

<pallas_src>
import functools

import jax
import jax.numpy as jnp
from jax.experimental import pallas as pl
from jax.experimental.pallas import tpu as pltpu


# ---------------------------------------------------------------------------
# Kernel bodies
# ---------------------------------------------------------------------------

def _conv_taps(xe, xo, xo_m1, xe_p1, w_ref, b_ref, o_ref):
    """Shared tap accumulation: y[t] = W0 x[2t-1] + W1 x[2t] + W2 x[2t+1] + W3 x[2t+2] + b."""
    mdt = w_ref.dtype
    acc = jnp.dot(w_ref[0], xo_m1.astype(mdt), preferred_element_type=jnp.float32)
    acc = acc + jnp.dot(w_ref[1], xe.astype(mdt), preferred_element_type=jnp.float32)
    acc = acc + jnp.dot(w_ref[2], xo.astype(mdt), preferred_element_type=jnp.float32)
    acc = acc + jnp.dot(w_ref[3], xe_p1.astype(mdt), preferred_element_type=jnp.float32)
    o_ref[0] = (acc + b_ref[...]).astype(o_ref.dtype)


def _conv_fused_kernel(x_ref, halo_ref, w_ref, b_ref, o_ref):
    """Fast path: one interleaved input block per step (single HBM read of x).

    x_ref    : (1, C, 2*TL)  raw input columns [2*TL*j, 2*TL*(j+1))
    halo_ref : (1, 1, C, 2)  [..., 0] = x[2*TL*j - 1], [..., 1] = x[2*TL*(j+1)]
    w_ref    : (4, C, C)     per-tap weights;  b_ref: (C, 1) float32 bias
    o_ref    : (1, C, TL)
    """
    c, tl = o_ref.shape[1], o_ref.shape[2]
    # In-kernel even/odd deinterleave: strided VMEM loads, no xe/xo HBM round trip.
    xe = x_ref[0, :, pl.ds(0, tl, stride=2)]          # x[2t]
    xo = x_ref[0, :, pl.ds(1, tl, stride=2)]          # x[2t+1]
    hl = halo_ref[0, 0, :, 0:1]                       # x[2*t0 - 1]   (zero at the left edge)
    hr = halo_ref[0, 0, :, 1:2]                       # x[2*(t0+TL)]  (zero at the right edge)
    # Shift by one output position via XLU roll + edge splice (no lane-misaligned concat copies).
    lane = jax.lax.broadcasted_iota(jnp.int32, (c, tl), 1)
    xo_m1 = jnp.where(lane == 0, hl, pltpu.roll(xo, shift=1, axis=1))        # x[2t-1]
    xe_p1 = jnp.where(lane == tl - 1, hr, pltpu.roll(xe, shift=-1, axis=1))  # x[2t+2]
    _conv_taps(xe, xo, xo_m1, xe_p1, w_ref, b_ref, o_ref)


def _conv_split_kernel(xe_ref, xo_ref, halo_ref, w_ref, b_ref, o_ref):
    """Fallback path: pre-deinterleaved inputs + concatenate shifts (proven lowering)."""
    tl = o_ref.shape[2]
    xe = xe_ref[0]
    xo = xo_ref[0]
    hl = halo_ref[0, 0, :, 0:1]
    hr = halo_ref[0, 0, :, 1:2]
    xo_m1 = jnp.concatenate([hl, xo[:, : tl - 1]], axis=1)   # x[2t-1]
    xe_p1 = jnp.concatenate([xe[:, 1:], hr], axis=1)         # x[2t+2]
    _conv_taps(xe, xo, xo_m1, xe_p1, w_ref, b_ref, o_ref)


def _pool_fused_kernel(x_ref, o_ref):
    """avg_pool1d(k=2, s=2) on an interleaved (BN, C, 2*TL) block."""
    tl = o_ref.shape[-1]
    xe = x_ref[:, :, pl.ds(0, tl, stride=2)].astype(jnp.float32)
    xo = x_ref[:, :, pl.ds(1, tl, stride=2)].astype(jnp.float32)
    o_ref[...] = ((xe + xo) * 0.5).astype(o_ref.dtype)


def _pool_split_kernel(xe_ref, xo_ref, o_ref):
    o_ref[...] = ((xe_ref[...].astype(jnp.float32) + xo_ref[...].astype(jnp.float32)) * 0.5
                  ).astype(o_ref.dtype)


# ---------------------------------------------------------------------------
# Tiling / VMEM model
# ---------------------------------------------------------------------------

_VMEM_BUDGET = 24 << 20   # per-step target; keeps double-buffering alive under v7x's 64 MiB


def _vmem_est(c_rows, tl, in_bytes, extra_bytes):
    # (input + output) blocks double-buffered + in-kernel f32 temporaries + resident operands.
    return 6 * c_rows * tl * in_bytes + 6 * c_rows * tl * 4 + extra_bytes + (1 << 20)


def _pick_tile_l(l_out, c_rows, in_bytes, extra_bytes, tile_l):
    """Length tile (lane axis): a multiple of 128, or the whole (short) L_out."""
    if tile_l is not None:
        if tile_l >= l_out:
            return l_out
        return max(128, (tile_l // 128) * 128)
    if l_out <= 1024 and _vmem_est(c_rows, l_out, in_bytes, extra_bytes) <= _VMEM_BUDGET:
        return l_out
    for t in (1024, 512, 256, 128):      # prefer the biggest tile that fits (v6e/v7x roofline)
        if t > l_out or _vmem_est(c_rows, t, in_bytes, extra_bytes) > _VMEM_BUDGET:
            continue
        waste = -(-l_out // t) * t - l_out
        if waste * 8 <= l_out or t == 128:   # avoid >12.5% pad waste if a smaller tile pads less
            return t
    return 128


# ---------------------------------------------------------------------------
# Wrapper
# ---------------------------------------------------------------------------

@functools.partial(jax.jit, static_argnames=("with_conv", "tile_l", "fused", "bf16_matmul"))
def _downsample_impl(x, weight=None, bias=None, *, with_conv, tile_l, fused, bf16_matmul):
    n, c, l = x.shape
    dtype = x.dtype
    in_b = jnp.dtype(dtype).itemsize

    l_out = l // 2                 # Conv1d(k=4,s=2,p=1) and avg_pool1d(k=2,s=2) both give L//2
    l_out_e = -(-l // 2)           # ceil(L/2): even-length view used for tiling/padding

    w_dtype = jnp.bfloat16 if (with_conv and bf16_matmul and dtype == jnp.float32) else dtype
    w_b = jnp.dtype(w_dtype).itemsize

    # Batch folding (fills sublanes, fewer grid steps) for the element-wise pool path.
    bn = 1
    if not with_conv and _vmem_est(n * c, 128, in_b, 0) <= _VMEM_BUDGET:
        bn = n
    c_rows = bn * c

    extra = 8 * c * c * w_b if with_conv else 0     # resident per-tap weights (double-buffered)
    tl = _pick_tile_l(l_out_e, c_rows, in_b, extra, tile_l)
    nt = -(-l_out_e // tl)
    l_out_pad = nt * tl
    l_pad = 2 * l_out_pad
    if l_pad > l:                   # pad so every tile is full; padded outputs are sliced off
        x = jnp.pad(x, ((0, 0), (0, 0), (0, l_pad - l)))

    cparams = pltpu.CompilerParams(
        dimension_semantics=("parallel", "parallel"),
        vmem_limit_bytes=int(min(128 << 20,
                                 max(32 << 20, int(1.25 * _vmem_est(c_rows, tl, in_b, extra))))),
    )
    out_shape = jax.ShapeDtypeStruct((n, c, l_out_pad), dtype)

    if not with_conv:
        out_spec = pl.BlockSpec((bn, c, tl), lambda i, j: (i, 0, j))
        if fused:
            y = pl.pallas_call(
                _pool_fused_kernel,
                out_shape=out_shape,
                grid=(n // bn, nt),
                in_specs=[pl.BlockSpec((bn, c, 2 * tl), lambda i, j: (i, 0, j))],
                out_specs=out_spec,
                compiler_params=cparams,
            )(x)
        else:
            y = pl.pallas_call(
                _pool_split_kernel,
                out_shape=out_shape,
                grid=(n // bn, nt),
                in_specs=[pl.BlockSpec((bn, c, tl), lambda i, j: (i, 0, j))] * 2,
                out_specs=out_spec,
                compiler_params=cparams,
            )(x[:, :, 0::2], x[:, :, 1::2])
        return y if l_out_pad == l_out else y[:, :, :l_out]

    assert weight is not None and bias is not None
    # Per-tap weights (4, C_out, C_in); bias stays float32 for the f32 accumulator.
    wt = jnp.transpose(weight, (2, 0, 1)).astype(w_dtype)
    b2 = jnp.reshape(bias, (c, 1)).astype(jnp.float32)

    # Per-tile halo columns, merged into one tiny (N, NT, C, 2) array (one small DMA per step):
    #   [..., 0] = x[2*TL*j - 1]  (left,  zero for j == 0 -> conv left zero-pad)
    #   [..., 1] = x[2*TL*(j+1)]  (right, zero for j == NT-1 -> conv right zero-pad)
    zero = jnp.zeros((n, c, 1), dtype)
    if nt > 1:
        prev = x[:, :, 2 * tl - 1: l_pad - 1: 2 * tl]    # columns 2*TL*j - 1, j = 1..NT-1
        nxt = x[:, :, 2 * tl: l_pad: 2 * tl]             # columns 2*TL*(j+1), j = 0..NT-2
        hl = jnp.concatenate([zero, prev], axis=2)
        hr = jnp.concatenate([nxt, zero], axis=2)
    else:
        hl, hr = zero, zero
    halo = jnp.transpose(jnp.stack([hl, hr], axis=-1), (0, 2, 1, 3))   # (N, NT, C, 2)

    out_spec = pl.BlockSpec((1, c, tl), lambda i, j: (i, 0, j))
    halo_spec = pl.BlockSpec((1, 1, c, 2), lambda i, j: (i, j, 0, 0))
    w_spec = pl.BlockSpec((4, c, c), lambda i, j: (0, 0, 0))
    b_spec = pl.BlockSpec((c, 1), lambda i, j: (0, 0))

    if fused:
        y = pl.pallas_call(
            _conv_fused_kernel,
            out_shape=out_shape,
            grid=(n, nt),
            in_specs=[pl.BlockSpec((1, c, 2 * tl), lambda i, j: (i, 0, j)),
                      halo_spec, w_spec, b_spec],
            out_specs=out_spec,
            compiler_params=cparams,
        )(x, halo, wt, b2)
    else:
        xe = x[:, :, 0::2]
        xo = x[:, :, 1::2]
        y = pl.pallas_call(
            _conv_split_kernel,
            out_shape=out_shape,
            grid=(n, nt),
            in_specs=[pl.BlockSpec((1, c, tl), lambda i, j: (i, 0, j)),
                      pl.BlockSpec((1, c, tl), lambda i, j: (i, 0, j)),
                      halo_spec, w_spec, b_spec],
            out_specs=out_spec,
            compiler_params=cparams,
        )(xe, xo, halo, wt, b2)
    return y if l_out_pad == l_out else y[:, :, :l_out]


# ---------------------------------------------------------------------------
# References + fast-path self-check + public entry point
# ---------------------------------------------------------------------------

def _conv_ref(x, weight, bias):
    y = jax.lax.conv_general_dilated(
        x, weight, window_strides=(2,), padding=[(1, 1)],
        dimension_numbers=("NCH", "OIH", "NCH"))
    return y + bias[None, :, None]


def _pool_ref(x):
    n, c, l = x.shape
    return x[:, :, : (l // 2) * 2].reshape(n, c, l // 2, 2).mean(-1)


_FUSED_STATE = {"checked": False, "ok": False}


def _fused_path_ok():
    """One-time self-check of the fused path (strided in-kernel deinterleave + pltpu.roll).

    If the running toolchain rejects (or miscompiles) the fast path, we permanently fall
    back to the proven split-input kernels so results stay correct and runs stay clean.
    """
    if _FUSED_STATE["checked"]:
        return _FUSED_STATE["ok"]
    ok = False
    try:
        key = jax.random.PRNGKey(42)
        kx, kw, kb, kx2 = jax.random.split(key, 4)
        # tiny single-tile case
        x1 = jax.random.normal(kx, (2, 4, 16), jnp.float32)
        w1 = 0.1 * jax.random.normal(kw, (4, 4, 4), jnp.float32)
        b1 = 0.1 * jax.random.normal(kb, (4,), jnp.float32)
        y1 = _downsample_impl(x1, w1, b1, with_conv=True, tile_l=None,
                              fused=True, bf16_matmul=False)
        # multi-tile case (exercises halos, rolls, strided loads across 128-lane tiles)
        x2 = jax.random.normal(kx2, (1, 8, 512), jnp.float32)
        w2 = 0.1 * jax.random.normal(kw, (8, 8, 4), jnp.float32)
        b2 = 0.1 * jax.random.normal(kb, (8,), jnp.float32)
        y2 = _downsample_impl(x2, w2, b2, with_conv=True, tile_l=128,
                              fused=True, bf16_matmul=False)
        p2 = _downsample_impl(x2, None, None, with_conv=False, tile_l=128,
                              fused=True, bf16_matmul=False)
        ok = (bool(jnp.allclose(y1, _conv_ref(x1, w1, b1), atol=1e-4, rtol=1e-4))
              and bool(jnp.allclose(y2, _conv_ref(x2, w2, b2), atol=1e-4, rtol=1e-4))
              and bool(jnp.allclose(p2, _pool_ref(x2), atol=1e-6, rtol=1e-6)))
    except Exception:
        ok = False
    _FUSED_STATE["checked"] = True
    _FUSED_STATE["ok"] = ok
    return ok


def downsample(x, weight=None, bias=None, *, with_conv=True, tile_l=None, bf16_matmul=False):
    """Pallas TPU port of the taming `Downsample` forward.

    x: (N, C, L); weight: (C, C, 4) torch Conv1d layout; bias: (C,).
    Returns (N, C, L // 2) with the same dtype as x.
    """
    if _fused_path_ok():
        try:
            return _downsample_impl(x, weight, bias, with_conv=with_conv, tile_l=tile_l,
                                    fused=True, bf16_matmul=bf16_matmul)
        except Exception:
            pass
    return _downsample_impl(x, weight, bias, with_conv=with_conv, tile_l=tile_l,
                            fused=False, bf16_matmul=bf16_matmul)


# ---------------------------------------------------------------------------
# Self-test
# ---------------------------------------------------------------------------

if __name__ == "__main__":
    key = jax.random.PRNGKey(0)
    k_x, k_w, k_b, k_x2, k_w2, k_b2 = jax.random.split(key, 6)

    # --- Case 1: module-default small shapes (single length tile). ---
    N, C, L = 2, 4, 16
    x = jax.random.normal(k_x, (N, C, L), dtype=jnp.float32)
    weight = 0.1 * jax.random.normal(k_w, (C, C, 4), dtype=jnp.float32)
    bias = 0.1 * jax.random.normal(k_b, (C,), dtype=jnp.float32)

    y = jax.block_until_ready(downsample(x, weight, bias, with_conv=True))
    assert y.shape == (N, C, L // 2)
    assert jnp.allclose(y, _conv_ref(x, weight, bias), atol=1e-4, rtol=1e-4), "conv mismatch"

    yp = jax.block_until_ready(downsample(x, with_conv=False))
    assert yp.shape == (N, C, L // 2)
    assert jnp.allclose(yp, _pool_ref(x), atol=1e-5, rtol=1e-5), "pool mismatch"

    # --- Case 2: multi-tile path (L_out = 256 -> two 128-lane tiles), exercises halos. ---
    N2, C2, L2 = 2, 8, 512
    x2 = jax.random.normal(k_x2, (N2, C2, L2), dtype=jnp.float32)
    w2 = 0.05 * jax.random.normal(k_w2, (C2, C2, 4), dtype=jnp.float32)
    b2 = 0.05 * jax.random.normal(k_b2, (C2,), dtype=jnp.float32)

    y2 = jax.block_until_ready(downsample(x2, w2, b2, with_conv=True, tile_l=128))
    assert y2.shape == (N2, C2, L2 // 2)
    assert jnp.allclose(y2, _conv_ref(x2, w2, b2), atol=1e-4, rtol=1e-4), "tiled conv mismatch"

    yp2 = jax.block_until_ready(downsample(x2, with_conv=False, tile_l=128))
    assert jnp.allclose(yp2, _pool_ref(x2), atol=1e-5, rtol=1e-5), "tiled pool mismatch"

    print("KERNEL_OK")
</pallas_src>

<mosaic_0001>
module attributes {stable_mosaic.version = 11 : i64} {
  func.func @_conv_split_kernel(%arg0: i32, %arg1: i32, %arg2: memref<1x4x8xf32, #tpu.memory_space<vmem>>, %arg3: memref<1x4x8xf32, #tpu.memory_space<vmem>>, %arg4: memref<1x1x4x2xf32, #tpu.memory_space<vmem>>, %arg5: memref<4x4x4xf32, #tpu.memory_space<vmem>>, %arg6: memref<4x1xf32, #tpu.memory_space<vmem>>, %arg7: memref<1x4x8xf32, #tpu.memory_space<vmem>>) attributes {dimension_semantics = [#tpu.dimension_semantics<parallel>, #tpu.dimension_semantics<parallel>], iteration_bounds = array<i64: 2, 1>, scalar_prefetch = 0 : i64, scratch_operands = 0 : i64, tpu.core_type = #tpu.core_type<tc>, window_params = [{transform_indices = @transform_0, window_bounds = array<i64: 1, 4, 8>}, {transform_indices = @transform_1, window_bounds = array<i64: 1, 4, 8>}, {transform_indices = @transform_2, window_bounds = array<i64: 1, 1, 4, 2>}, {pipeline_mode = #tpu.pipeline_mode<synchronous>, transform_indices = @transform_3, window_bounds = array<i64: 4, 4, 4>}, {pipeline_mode = #tpu.pipeline_mode<synchronous>, transform_indices = @transform_4, window_bounds = array<i64: 4, 1>}, {transform_indices = @transform_5, window_bounds = array<i64: 1, 4, 8>}]} {
    %c0 = arith.constant 0 : index
    %c0_0 = arith.constant 0 : index
    %c0_1 = arith.constant 0 : index
    %0 = vector.load %arg2[%c0, %c0_0, %c0_1] : memref<1x4x8xf32, #tpu.memory_space<vmem>>, vector<1x4x8xf32>
    %1 = vector.shape_cast %0 : vector<1x4x8xf32> to vector<4x8xf32>
    %c0_2 = arith.constant 0 : index
    %c0_3 = arith.constant 0 : index
    %c0_4 = arith.constant 0 : index
    %2 = vector.load %arg3[%c0_2, %c0_3, %c0_4] : memref<1x4x8xf32, #tpu.memory_space<vmem>>, vector<1x4x8xf32>
    %3 = vector.shape_cast %2 : vector<1x4x8xf32> to vector<4x8xf32>
    %c0_5 = arith.constant 0 : index
    %c0_6 = arith.constant 0 : index
    %c0_7 = arith.constant 0 : index
    %c0_8 = arith.constant 0 : index
    %4 = vector.load %arg4[%c0_5, %c0_6, %c0_7, %c0_8] : memref<1x1x4x2xf32, #tpu.memory_space<vmem>>, vector<1x1x4x1xf32>
    %5 = vector.shape_cast %4 : vector<1x1x4x1xf32> to vector<4x1xf32>
    %c0_9 = arith.constant 0 : index
    %c0_10 = arith.constant 0 : index
    %c0_11 = arith.constant 0 : index
    %c1 = arith.constant 1 : index
    %6 = vector.load %arg4[%c0_9, %c0_10, %c0_11, %c1] : memref<1x1x4x2xf32, #tpu.memory_space<vmem>>, vector<1x1x4x1xf32>
    %7 = vector.shape_cast %6 : vector<1x1x4x1xf32> to vector<4x1xf32>
    %8 = vector.extract_strided_slice %3 {offsets = [0, 0], sizes = [4, 7], strides = [1, 1]} : vector<4x8xf32> to vector<4x7xf32>
    %9 = tpu.concatenate %5, %8 in 1 : vector<4x1xf32>, vector<4x7xf32> -> vector<4x8xf32>
    %10 = vector.extract_strided_slice %1 {offsets = [0, 1], sizes = [4, 7], strides = [1, 1]} : vector<4x8xf32> to vector<4x7xf32>
    %11 = tpu.concatenate %10, %7 in 1 : vector<4x7xf32>, vector<4x1xf32> -> vector<4x8xf32>
    %c0_12 = arith.constant 0 : index
    %c0_13 = arith.constant 0 : index
    %c0_14 = arith.constant 0 : index
    %12 = vector.load %arg5[%c0_12, %c0_13, %c0_14] : memref<4x4x4xf32, #tpu.memory_space<vmem>>, vector<1x4x4xf32>
    %13 = vector.shape_cast %12 : vector<1x4x4xf32> to vector<4x4xf32>
    %cst = arith.constant dense<0.000000e+00> : vector<4x8xf32>
    %14 = tpu.matmul %13, %9, %cst {dimension_numbers = #tpu.dot_dimension_numbers<[1], [0], [0], [1], [0, 0, 1, 1], [], []>} : vector<4x4xf32>, vector<4x8xf32>, vector<4x8xf32> -> vector<4x8xf32>
    %c1_15 = arith.constant 1 : index
    %c0_16 = arith.constant 0 : index
    %c0_17 = arith.constant 0 : index
    %15 = vector.load %arg5[%c1_15, %c0_16, %c0_17] : memref<4x4x4xf32, #tpu.memory_space<vmem>>, vector<1x4x4xf32>
    %16 = vector.shape_cast %15 : vector<1x4x4xf32> to vector<4x4xf32>
    %cst_18 = arith.constant dense<0.000000e+00> : vector<4x8xf32>
    %17 = tpu.matmul %16, %1, %cst_18 {dimension_numbers = #tpu.dot_dimension_numbers<[1], [0], [0], [1], [0, 0, 1, 1], [], []>} : vector<4x4xf32>, vector<4x8xf32>, vector<4x8xf32> -> vector<4x8xf32>
    %18 = arith.addf %14, %17 : vector<4x8xf32>
    %c2 = arith.constant 2 : index
    %c0_19 = arith.constant 0 : index
    %c0_20 = arith.constant 0 : index
    %19 = vector.load %arg5[%c2, %c0_19, %c0_20] : memref<4x4x4xf32, #tpu.memory_space<vmem>>, vector<1x4x4xf32>
    %20 = vector.shape_cast %19 : vector<1x4x4xf32> to vector<4x4xf32>
    %cst_21 = arith.constant dense<0.000000e+00> : vector<4x8xf32>
    %21 = tpu.matmul %20, %3, %cst_21 {dimension_numbers = #tpu.dot_dimension_numbers<[1], [0], [0], [1], [0, 0, 1, 1], [], []>} : vector<4x4xf32>, vector<4x8xf32>, vector<4x8xf32> -> vector<4x8xf32>
    %22 = arith.addf %18, %21 : vector<4x8xf32>
    %c3 = arith.constant 3 : index
    %c0_22 = arith.constant 0 : index
    %c0_23 = arith.constant 0 : index
    %23 = vector.load %arg5[%c3, %c0_22, %c0_23] : memref<4x4x4xf32, #tpu.memory_space<vmem>>, vector<1x4x4xf32>
    %24 = vector.shape_cast %23 : vector<1x4x4xf32> to vector<4x4xf32>
    %cst_24 = arith.constant dense<0.000000e+00> : vector<4x8xf32>
    %25 = tpu.matmul %24, %11, %cst_24 {dimension_numbers = #tpu.dot_dimension_numbers<[1], [0], [0], [1], [0, 0, 1, 1], [], []>} : vector<4x4xf32>, vector<4x8xf32>, vector<4x8xf32> -> vector<4x8xf32>
    %26 = arith.addf %22, %25 : vector<4x8xf32>
    %c0_25 = arith.constant 0 : index
    %c0_26 = arith.constant 0 : index
    %27 = vector.load %arg6[%c0_25, %c0_26] : memref<4x1xf32, #tpu.memory_space<vmem>>, vector<4x1xf32>
    %28 = vector.broadcast %27 : vector<4x1xf32> to vector<4x8xf32>
    %29 = arith.addf %26, %28 : vector<4x8xf32>
    %c0_27 = arith.constant 0 : index
    %c0_28 = arith.constant 0 : index
    %c0_29 = arith.constant 0 : index
    %30 = vector.load %arg7[%c0_27, %c0_28, %c0_29] : memref<1x4x8xf32, #tpu.memory_space<vmem>>, vector<1x4x8xf32>
    %31 = vector.shape_cast %30 : vector<1x4x8xf32> to vector<4x8xf32>
    %32 = vector.shape_cast %29 : vector<4x8xf32> to vector<1x4x8xf32>
    tpu.vector_store %arg7[%c0_27, %c0_28, %c0_29], %32 {strides = array<i32>} : memref<1x4x8xf32, #tpu.memory_space<vmem>>, vector<1x4x8xf32>,
    return
  }
  func.func @transform_0(%arg0: i32, %arg1: i32) -> (i32, i32, i32) {
    %c0_i32 = arith.constant 0 : i32
    %c0_i32_0 = arith.constant 0 : i32
    return %arg0, %c0_i32, %arg1 : i32, i32, i32
  }
  func.func @transform_1(%arg0: i32, %arg1: i32) -> (i32, i32, i32) {
    %c0_i32 = arith.constant 0 : i32
    %c0_i32_0 = arith.constant 0 : i32
    return %arg0, %c0_i32, %arg1 : i32, i32, i32
  }
  func.func @transform_2(%arg0: i32, %arg1: i32) -> (i32, i32, i32, i32) {
    %c0_i32 = arith.constant 0 : i32
    %c0_i32_0 = arith.constant 0 : i32
    %c0_i32_1 = arith.constant 0 : i32
    return %arg0, %arg1, %c0_i32, %c0_i32_0 : i32, i32, i32, i32
  }
  func.func @transform_3(%arg0: i32, %arg1: i32) -> (i32, i32, i32) {
    %c0_i32 = arith.constant 0 : i32
    %c0_i32_0 = arith.constant 0 : i32
    %c0_i32_1 = arith.constant 0 : i32
    %c0_i32_2 = arith.constant 0 : i32
    return %c0_i32, %c0_i32_0, %c0_i32_1 : i32, i32, i32
  }
  func.func @transform_4(%arg0: i32, %arg1: i32) -> (i32, i32) {
    %c0_i32 = arith.constant 0 : i32
    %c0_i32_0 = arith.constant 0 : i32
    %c0_i32_1 = arith.constant 0 : i32
    return %c0_i32, %c0_i32_0 : i32, i32
  }
  func.func @transform_5(%arg0: i32, %arg1: i32) -> (i32, i32, i32) {
    %c0_i32 = arith.constant 0 : i32
    %c0_i32_0 = arith.constant 0 : i32
    return %arg0, %c0_i32, %arg1 : i32, i32, i32
  }
}

</mosaic_0001>

<bundles_post_ra>
// kernel: _downsample_impl.1
= control target key start
LH: loop header
LB: loop body
LE: loop exit
PB: predicated region body
PF: predicated region fallthrough
CT: control target
= control target key end

     0   :  { %10 = vsyncpa [#allocation3], 0  ;;  %s885_s0 = inlined_call_operand.vmem [shape: f32[2,4,8], index: 0, kind: input, shape index: {}]   ;;  %s886_s1 = inlined_call_operand.vmem [shape: f32[2,4,8], index: 1, kind: input, shape index: {}]   ;;  %s887_s2 = inlined_call_operand.vmem [shape: f32[2,1,4,2], index: 2, kind: input, shape index: {}]   ;;  %s888_s3 = inlined_call_operand.vmem [shape: f32[4,4,4], index: 3, kind: input, shape index: {}]   ;;  %s889_s4 = inlined_call_operand.vmem [shape: f32[4,1], index: 4, kind: input, shape index: {}]   ;;  %s890_s5 = inlined_call_operand.hbm [shape: f32[2,4,8], index: 5, kind: output, shape index: {}]  }
   0x1   :  { %12 = vsyncpa [#allocation3 + $0x1], 0  ;;  %s759_s18 = smov 0   ;;  %s761_s19 = smov 0  }
   0x2   :  { %s763_s20 = smov 0   ;;  %s765_s21 = smov 0  }
   0x3   :  { %s767_s22 = smov 0   ;;  %s769_s23 = smov 0  }
   0x4 LB: > { %s560_s24 = sadd.s32 4294967295, %s723_s23   ;;  %s561_s25 = sadd.s32 4294967294, %s723_s23   ;;  %s723_s23 = sphi %s769_s23, %s18_s23   ;;  %s719_s22 = sphi %s767_s22, %s897_s22   ;;  %s715_s21 = sphi %s765_s21, %s896_s21   ;;  %s711_s20 = sphi %s763_s20, %s895_s20   ;;  %s707_s19 = sphi %s761_s19, %s894_s19   ;;  %s703_s18 = sphi %s759_s18, %s893_s18  }
   0x5   : > { %s30_s26 = sadd.s32 1, %s719_s22  ;;  %s165_s27 = sadd.s32 1, %s711_s20 }
   0x6   : > { %p32_p0 = scmp.ge.s32.totalorder %s30_s26, 2  ;;  %p175_p1 = scmp.ne.s32.totalorder %s711_s20, %s707_s19 }
   0x7   : > { %p176_p2 = scmp.eq.s32.totalorder %s560_s24, 1  ;;  %p181_p3 = scmp.ne.s32.totalorder %s707_s19, %s703_s18 }
   0x8   : > { %s899_s26 = smov (%p32_p0, %s30_s26), 0  ;;  %p182_p5 = scmp.eq.s32.totalorder %s561_s25, 1 }
   0x9   : > { %p799_p4 = por %p176_p2, %p175_p1  ;;  %s160_s29 = ssub.s32 %s719_s22, %s899_s26 }
   0xa   : > { %p564_p6 = scmp.ge.s32.totalorder %s723_s23, 1  ;;  %p163_p7 = scmp.eq.s32.totalorder %s160_s29, 0 }
   0xb   : > { %p806_p8 = por %p182_p5, %p181_p3  ;;  %p236_p9 = scmp.lt.s32.totalorder %s723_s23, 3 }
   0xc   : > { %s812_s6 = scalar_select %p163_p7, %s711_s20, %s165_s27  }
   0xd   : > { %p237_p10 = pnand %p564_p6, %p236_p9 }
   0xe   : > { %p280_p11 = scmp.lt.s32.totalorder (!%p237_p10), %s715_s21, 1  ;;  %s725_s15 = smov (!%p237_p10), 127  }
   0xf   : > { %240 = sbr.rel (%p237_p10) target bundleno = 289 (0x121), region = 40  ;;  %s726_s16 = smov (!%p237_p10), 1  }
  0x10   : > { %s727_s27 = smov (!%p237_p10), 6   ;;  %s581_s24 = sshll.u32 (!%p237_p10), %s715_s21, 2 }
  0x11   : > { %s454_s29 = scalar_lea.hbm (!%p237_p10), %s890_s5, %s581_s24 }
  0x12   : > { %s458_s10 = sshll.u32 (!%p237_p10), %s454_s29, 4  ;;  %s459_s10 = int_to_ptr.hbm [resolvable:$true] %s458_s10 }
  0x14   : > { %s281_s7 = scalar_select %p280_p11, %s715_s21, 1  ;;  %vm327_vm0 = vcmask 1043456   ;;  %vm323_vm1 = vcmask 31744   ;;  %v574_v3 = vld [vmem:[%s888_s3 + $0x8] sm:$0xf]  ;;  %v728_v5 = vmov 0  }
  0x15   : > { %v569_v4 = vld [vmem:[%s888_s3 + $0x4] sm:$0xf]  ;;  %643 = vset.pattern.permute.xlu1 %v728_v5  ;;  %v433_v6 = vld [vmem:[%s889_s4] sm:$0xf]  ;;  %644 = vset.pattern.permute.xlu0 %v728_v5  ;;  %vm308_vm2 = vcmask 7168   ;;  %vm318_vm3 = vcmask 56320  }
  0x16   : > { %s566_s8 = sshll.u32 %s281_s7, 2  ;;  %v320_v9 = vld [vmem:[%s888_s3] sm:$0xf]  ;;  %v577_v12 = vld [vmem:[%s888_s3 + $0xc] sm:$0xf]  ;;  %vm440_vm4 = vcmask 60416  }
  0x17   : > { %s286_s11 = scalar_lea.vmem %s885_s0, %s566_s8  ;;  %s293_s14 = scalar_lea.vmem %s886_s1, %s566_s8 }
  0x18   : > { %v301_v0 = vld [vmem:[%s286_s11] sm:$0xf]  ;;  %s300_s25 = scalar_lea.vmem %s887_s2, %s566_s8  ;;  %s659_s11 = sshra.s32 %s459_s10, 4  ;;  %s660_s11 = int_to_ptr.hbm [resolvable:$true] %s659_s11 }
  0x19   : > { %311 = vrot.lane.b32.xlu0 %v301_v0, %s725_s15  ;;  %v302_v1 = vld [vmem:[%s293_s14] sm:$0xf]  ;;  %570 = vmatpush.msk.msra.mxu0 %vm327_vm0, %v301_v0  ;;  %s661_s21 = scalar_lea.hbm %s660_s11, 4  ;;  %s665_s14 = scalar_lea.hbm %s890_s5, 8 }
  0x1a   : > { %305 = vrot.lane.b32.xlu1 %v302_v1, %s726_s16  ;;  %v303_v2 = vld [vmem:[%s300_s25] sm:$0xf]  ;;  %575 = vmatpush.msk.msra.mxu2 %vm327_vm0, %v302_v1  ;;  %s277_s16 = sand.u32 1, %s707_s19   ;;  %p662_p12 = scmp.ne.s32.totalorder %s660_s11, %s661_s21 }
  0x1b   : > { %576 = vmatmul.msk.f32.vlgmr.msra.gmra.mxu2 %vm323_vm1, %v574_v3  ;;  %571 = vmatmul.msk.f32.vlgmr.msra.gmra.mxu0 %vm323_vm1, %v569_v4  ;;  %s565_s17 = sshll.u32 %s277_s16, 2  ;;  %s443_s8 = scalar_lea.sflag [#allocation3], %s277_s16 }
  0x1c   : > { %s279_s7 = scalar_lea.vmem [#allocation2], %s565_s17  ;;  %p663_p13 = pnand %p662_p12, %p799_p4 }
  0x1d   : > { %s456_s9 = sshll.u32 %s279_s7, 4  ;;  %p666_p1 = scmp.lt.s32.totalorder %s660_s11, %s890_s5  ;;  %s457_s9 = int_to_ptr.vmem [resolvable:$true] %s456_s9 }
  0x1e   : > { %p664_p0 = pneg %p663_p13  ;;  %p667_p2 = scmp.lt.s32.totalorder %s665_s14, %s661_s21 }
  0x20   : > { %p668_p3 = por %p667_p2, %p666_p1 }
  0x21   : > { %315 = vrot.lane.b32.xlu0 %v303_v2, %s727_s27 }
  0x22   : > { %436 = vperm.xlu1 %643, %v433_v6   ;;  %p669_p5 = pnand %p668_p3, %p664_p0 }
  0x8b   : > { %v312_v7 = vpop.permute.xlu0 %311 }
  0x8c   : > { %v306_v8 = vpop.permute.xlu1 %305 }
  0x8d   : > { %v309_v10 = vsel %vm308_vm2, %v303_v2, %v306_v8 }
  0x8e   : > { %572 = vmatpush.msk.msra.mxu1 %vm327_vm0, %v309_v10 }
  0x8f   : > { %573 = vmatmul.msk.f32.vlgmr.msra.gmra.mxu1 %vm323_vm1, %v320_v9 }
  0x93   : > { %v316_v11 = vpop.permute.xlu0 %315 }
  0x94   : > { %v319_v13 = vsel %vm318_vm3, %v312_v7, %v316_v11  ;;  %v437_v20 = vpop.permute.xlu1 %436 }
  0x95   : > { %578 = vmatpush.msk.msra.mxu3 %vm327_vm0, %v319_v13 }
  0x96   : > { %579 = vmatmul.msk.f32.vlgmr.msra.gmra.mxu3 %vm323_vm1, %v577_v12 }
  0x98   : > { %v347_v14 = vpop.f32.mrf.mxu0 }
  0x9e   : > { %v400_v17 = vpop.f32.mrf.mxu2 }
 0x10c   : > { %v373_v15 = vpop.f32.mrf.mxu1 }
 0x10d   : > { %v374_v16 = vadd.f32 %v373_v15, %v347_v14 }
 0x10f   : > { %v403_v18 = vadd.f32 %v400_v17, %v374_v16 }
 0x119   : > { %v429_v19 = vpop.f32.mrf.mxu3 }
 0x11a   : > { %v432_v21 = vadd.f32 %v429_v19, %v403_v18 }
 0x11c   : > { %v439_v22 = vadd.f32 %v437_v20, %v432_v21 }
 0x11e   : > { %441 = vst.msk [vmem:[%s279_s7] sm:$0xf] %vm440_vm4, %v439_v22 }
 0x11f   : > { %672 = shalt.err (!%p669_p5)
}
 0x120   : > { %584 = dma.vmem_to_hbm [thread:$0]  (%p799_p4), %s457_s9, 64, %s459_s10, %s443_s8  }
 0x121 PF: > { %p590_p6 = scmp.ge.s32.totalorder %s723_s23, 2  ;;  %s470_s16 = sand.u32 1, %s703_s18  }
 0x122   : > { %s471_s24 = scalar_lea.sflag [#allocation3], %s470_s16 }
 0x123   : > { %p587_p7 = pnand %p590_p6, %p806_p8 }
 0x125   : > { %p588_p9 = pneg %p587_p7 }
 0x127   : > { %698 = dma.done.wait (%p588_p9), %s471_s24, 64  }
 0x128   : > { %700 = vsyncadd (%p588_p9), %s471_s24, 4294967232  ;;  %s18_s23 = sadd.s32 1, %s723_s23   ;;  %s893_s18 = smov %s707_s19 }
 0x129   : > { %p15_p10 = scmp.ge.s32.totalorder %s18_s23, 4   ;;  %s894_s19 = smov %s711_s20 }
 0x12a   : > { %s895_s20 = smov %s812_s6  ;;  %s896_s21 = smov %s719_s22 }
 0x12b   : > { %s897_s22 = smov %s899_s26  ;;  %17 = sbr.rel (!%p15_p10) target bundleno = 4 (0x4), region = 84 }
 0x130   :  { %477 = vsyncpa [#allocation3], 1 }
 0x131   :  { %479 = vsyncpa [#allocation3 + $0x1], 1 }

</bundles_post_ra>
